<compile_context>
chip_gen: v7x
topology: tpu7x:2x2x1
jax: 0.10.0
libtpu: 0.0.40
codegen_flags: <defaults>
</compile_context>

<pallas_src>
import functools
import math

import jax
import jax.numpy as jnp
from jax.experimental import pallas as pl
from jax.experimental.pallas import tpu as pltpu

EPS = 1e-15        # guards divisions by zero norms
BALL_EPS = 1e-5    # keeps artanh argument strictly inside (-1, 1)

_WEIGHT_VMEM_BUDGET = 24 * 1024 * 1024   # budget for the VMEM-resident weight block(s)
_TILE_VMEM_BUDGET = 40 * 1024 * 1024     # budget for everything (fits v7x 64 MiB with headroom)


def _round_up(a, b):
    return ((a + b - 1) // b) * b


def _artanh(z):
    z = jnp.clip(z, -1.0 + BALL_EPS, 1.0 - BALL_EPS)
    return 0.5 * jnp.log((1.0 + z) / (1.0 - z))


def _hyp_linear_kernel(*refs, c, use_bias):
    if use_bias:
        x_ref, wt_ref, b_ref, o_ref, acc_xw, acc_xsq = refs
    else:
        x_ref, wt_ref, o_ref, acc_xw, acc_xsq = refs
        b_ref = None

    k = pl.program_id(1)
    nk = pl.num_programs(1)

    @pl.when(k == 0)
    def _init():
        acc_xw[...] = jnp.zeros_like(acc_xw)
        acc_xsq[...] = jnp.zeros_like(acc_xsq)

    # ---- Accumulate x @ W^T and ||x||^2 over the K grid axis (MXU + one reduce) ----
    xb = x_ref[...]                                                # native dtype -> MXU
    acc_xw[...] += jnp.dot(xb, wt_ref[...], preferred_element_type=jnp.float32)
    xf = xb.astype(jnp.float32)
    acc_xsq[...] += jnp.sum(xf * xf, axis=-1, keepdims=True)

    # ---- Epilogue: hyperbolic math on the finished row block (f32, VPU/XLU/EUP) ----
    @pl.when(k == nk - 1)
    def _epilogue():
        sqrt_c = jnp.float32(math.sqrt(c))
        cc = jnp.float32(c)

        xw = acc_xw[...]                                           # (tm, Np) f32
        x_norm = jnp.sqrt(acc_xsq[...])                            # (tm, 1)
        xw_sq = jnp.sum(xw * xw, axis=-1, keepdims=True)           # (tm, 1)
        xw_norm = jnp.sqrt(xw_sq)

        # Möbius matrix-vector multiplication (mf.linear)
        ratio = xw_norm * (1.0 / (x_norm + EPS))
        gain = jnp.tanh(ratio * _artanh(sqrt_c * x_norm)) * (
            1.0 / (sqrt_c * (xw_norm + EPS)))                      # (tm, 1)
        y = gain * xw                                              # (tm, Np)

        if use_bias:
            b = b_ref[...].astype(jnp.float32)                     # (1, Np)
            b_sq = jnp.sum(b * b, axis=-1, keepdims=True)          # (1, 1)  (single row)
            b_norm = jnp.sqrt(b_sq)

            y_sq = gain * gain * xw_sq                             # ||y||^2 without extra reduce
            one_minus = 1.0 - cc * y_sq                            # 1 - c||y||^2
            factor = jnp.maximum(one_minus, EPS)                   # clamped (as in zarya)

            # parallel transport of b to y:  u = factor * b,  ||u|| = factor * ||b||
            u_norm = factor * b_norm                               # (tm, 1)
            # exp map at y: tanh(sqrt_c * lam_y * ||u|| / 2) == tanh(sqrt_c * ||b||)
            # (lam_y = 2/factor cancels exactly against ||u|| = factor*||b||)
            t = jnp.tanh(sqrt_c * b_norm) * (1.0 / (sqrt_c * (u_norm + EPS)))   # (tm, 1)
            tf = t * factor                                        # v = tf * b  (never materialized alone)

            # Möbius addition  y ⊕_c v
            xwb = jnp.sum(xw * b, axis=-1, keepdims=True)          # (tm, 1)  the only other reduce
            yv = gain * tf * xwb                                   # y·v
            v_sq = tf * tf * b_sq                                  # ||v||^2
            a1 = 1.0 + 2.0 * cc * yv
            num = (a1 + cc * v_sq) * y + (one_minus * tf) * b      # (tm, Np)
            den = a1 + (cc * cc) * y_sq * v_sq                     # (tm, 1)
            out = num * (1.0 / (den + EPS))                        # column reciprocal, broadcast mul
        else:
            out = y

        o_ref[...] = out.astype(o_ref.dtype)


def hyperbolic_linear(x, weight, bias=None, c=1.0, tm=None):
    """Poincaré-ball linear layer. x: (..., in_features), weight: (out, in), bias: (out,)."""
    orig_lead = x.shape[:-1]
    out_features, in_features = weight.shape
    assert x.shape[-1] == in_features

    x2 = x.reshape(-1, in_features)
    m = x2.shape[0]
    K = in_features
    N = out_features
    Np = max(128, _round_up(N, 128))          # lane-dense output (avoids masked stores)

    in_dtype = x2.dtype
    x_bytes = jnp.dtype(in_dtype).itemsize
    w_bytes = jnp.dtype(weight.dtype).itemsize
    o_bytes = x_bytes

    # ---- K tiling: keep the VMEM-resident weight block(s) under budget (v7x: 64 MiB) ----
    full_w_bytes = K * Np * w_bytes
    if full_w_bytes <= _WEIGHT_VMEM_BUDGET:
        tk = K
        K_pad = K
        wt_buffers = 1            # constant block -> single-buffered
    else:
        tk = max(128, ((_WEIGHT_VMEM_BUDGET // (2 * Np * w_bytes)) // 128) * 128)
        K_pad = _round_up(K, tk)
        wt_buffers = 2            # block changes along K -> default double buffering

    # ---- M tiling: big tiles, but keep >=2 grid steps when the batch allows (megacore) ----
    if tm is None:
        half8 = _round_up(max(1, -(-m // 2)), 8)
        tm = min(256, max(8, half8), max(8, _round_up(m, 8)))
    tm = max(8, _round_up(tm, 8))

    def _vmem_est(tm_):
        est = wt_buffers * tk * Np * w_bytes        # weight buffers
        est += 2 * tm_ * tk * x_bytes               # x, double-buffered
        est += 2 * tm_ * Np * o_bytes               # out, double-buffered
        est += tm_ * Np * 4 + tm_ * 128 * 4         # accumulator scratch
        est += 3 * tm_ * Np * 4                     # epilogue temporaries headroom
        est += Np * 4                               # bias
        return est

    while tm > 8 and _vmem_est(tm) > _TILE_VMEM_BUDGET:
        tm = max(8, _round_up(tm // 2, 8))

    m_pad = _round_up(max(m, 1), tm)
    grid_m = m_pad // tm
    grid_k = K_pad // tk

    # ---- pad operands (zero padding is mathematically inert for every term) ----
    x_p = x2
    if m_pad != m or K_pad != K:
        x_p = jnp.pad(x2, ((0, m_pad - m), (0, K_pad - K)))
    wt = weight.T                                  # (K, N), native dtype (no f32 pre-cast)
    if K_pad != K or Np != N:
        wt = jnp.pad(wt, ((0, K_pad - K), (0, Np - N)))

    use_bias = bias is not None
    args = [x_p, wt]
    wt_kwargs = {"pipeline_mode": pl.Buffered(1)} if grid_k == 1 else {}
    in_specs = [
        pl.BlockSpec((tm, tk), lambda i, k: (i, k)),
        pl.BlockSpec((tk, Np), lambda i, k: (k, 0), **wt_kwargs),
    ]
    if use_bias:
        b_p = bias.reshape(1, N)
        if Np != N:
            b_p = jnp.pad(b_p, ((0, 0), (0, Np - N)))
        args.append(b_p)
        in_specs.append(
            pl.BlockSpec((1, Np), lambda i, k: (0, 0), pipeline_mode=pl.Buffered(1)))

    vmem_limit = int(min(100 * 2**20, max(32 * 2**20, int(_vmem_est(tm) * 1.25))))

    cost = pl.CostEstimate(
        flops=2 * m_pad * K_pad * Np,
        transcendentals=8 * m_pad,
        bytes_accessed=(m_pad * K_pad * x_bytes + K_pad * Np * w_bytes
                        + m_pad * Np * o_bytes + (Np * 4 if use_bias else 0)),
    )

    out = pl.pallas_call(
        functools.partial(_hyp_linear_kernel, c=float(c), use_bias=use_bias),
        out_shape=jax.ShapeDtypeStruct((m_pad, Np), in_dtype),
        grid_spec=pltpu.PrefetchScalarGridSpec(
            num_scalar_prefetch=0,
            grid=(grid_m, grid_k),
            in_specs=in_specs,
            out_specs=pl.BlockSpec((tm, Np), lambda i, k: (i, 0)),
            scratch_shapes=[
                pltpu.VMEM((tm, Np), jnp.float32),   # x @ W^T accumulator
                pltpu.VMEM((tm, 1), jnp.float32),    # ||x||^2 accumulator
            ],
        ),
        compiler_params=pltpu.CompilerParams(
            dimension_semantics=("parallel", "arbitrary"),
            vmem_limit_bytes=vmem_limit,
        ),
        cost_estimate=cost,
    )(*args)

    return out[:m, :N].reshape(orig_lead + (N,))


# ---------------------- pure-JAX reference (for verification) ----------------------
def _ref_hyperbolic_linear(x, weight, bias, c=1.0):
    sqrt_c = math.sqrt(c)
    xw = x @ weight.T
    x_norm = jnp.linalg.norm(x, axis=-1, keepdims=True)
    xw_norm = jnp.linalg.norm(xw, axis=-1, keepdims=True)
    artanh = jnp.arctanh(jnp.clip(sqrt_c * x_norm, -1 + BALL_EPS, 1 - BALL_EPS))
    y = jnp.tanh(xw_norm / (x_norm + EPS) * artanh) * xw / (sqrt_c * (xw_norm + EPS))
    if bias is None:
        return y
    y_sq = jnp.sum(y * y, axis=-1, keepdims=True)
    factor = jnp.maximum(1.0 - c * y_sq, EPS)
    lam_y = 2.0 / factor
    u = factor * bias
    u_norm = jnp.linalg.norm(u, axis=-1, keepdims=True)
    v = jnp.tanh(sqrt_c * lam_y * u_norm / 2.0) * u / (sqrt_c * (u_norm + EPS))
    v_sq = jnp.sum(v * v, axis=-1, keepdims=True)
    yv = jnp.sum(y * v, axis=-1, keepdims=True)
    num = (1.0 + 2.0 * c * yv + c * v_sq) * y + (1.0 - c * y_sq) * v
    den = 1.0 + 2.0 * c * yv + c * c * y_sq * v_sq
    return num / (den + EPS)


if __name__ == "__main__":
    in_features, out_features, batch = 32, 16, 48   # batch=48 -> 2 M-tiles (exercises the grid)

    key = jax.random.PRNGKey(0)
    kx, kw, kb = jax.random.split(key, 3)

    # Deterministic parameter init matching the PyTorch module's reset_parameters():
    #   kaiming_uniform_(weight, a=sqrt(5))  ->  U(-1/sqrt(fan_in), 1/sqrt(fan_in))
    #   uniform_(bias, -0.001, 0.001)
    bound = 1.0 / math.sqrt(in_features)
    weight = jax.random.uniform(kw, (out_features, in_features), jnp.float32, -bound, bound)
    bias = jax.random.uniform(kb, (out_features,), jnp.float32, -0.001, 0.001)

    # Input points must live inside the unit Poincaré ball (||x|| < 1).
    raw = jax.random.normal(kx, (batch, in_features), jnp.float32)
    raw_norm = jnp.linalg.norm(raw, axis=-1, keepdims=True)
    x = raw * (0.7 / (1.0 + raw_norm))

    out = jax.block_until_ready(hyperbolic_linear(x, weight, bias, c=1.0))
    ref = _ref_hyperbolic_linear(x, weight, bias, c=1.0)
    assert out.shape == (batch, out_features)
    assert jnp.allclose(out, ref, atol=1e-5, rtol=1e-5), "bias path mismatch vs pure-JAX reference"

    out_nb = jax.block_until_ready(hyperbolic_linear(x, weight, None, c=1.0))
    ref_nb = _ref_hyperbolic_linear(x, weight, None, c=1.0)
    assert jnp.allclose(out_nb, ref_nb, atol=1e-5, rtol=1e-5), "no-bias path mismatch vs reference"

    print("KERNEL_OK")
</pallas_src>

<mosaic_0001>
module attributes {stable_mosaic.version = 11 : i64} {
  func.func @_hyp_linear_kernel(%arg0: i32, %arg1: i32, %arg2: memref<24x32xf32, #tpu.memory_space<vmem>>, %arg3: memref<32x128xf32, #tpu.memory_space<vmem>>, %arg4: memref<1x128xf32, #tpu.memory_space<vmem>>, %arg5: memref<24x128xf32, #tpu.memory_space<vmem>>, %arg6: memref<24x128xf32, #tpu.memory_space<vmem>>, %arg7: memref<24x1xf32, #tpu.memory_space<vmem>>) attributes {dimension_semantics = [#tpu.dimension_semantics<parallel>, #tpu.dimension_semantics<arbitrary>], iteration_bounds = array<i64: 2, 1>, scalar_prefetch = 0 : i64, scratch_operands = 2 : i64, tpu.core_type = #tpu.core_type<tc>, window_params = [{transform_indices = @transform_0, window_bounds = array<i64: 24, 32>}, {pipeline_mode = #tpu.pipeline_mode<synchronous>, transform_indices = @transform_1, window_bounds = array<i64: 32, 128>}, {pipeline_mode = #tpu.pipeline_mode<synchronous>, transform_indices = @transform_2, window_bounds = array<i64: 1, 128>}, {transform_indices = @transform_3, window_bounds = array<i64: 24, 128>}]} {
    %c0_i32 = arith.constant 0 : i32
    %0 = arith.cmpi eq, %arg1, %c0_i32 : i32
    %1 = arith.extui %0 : i1 to i32
    %c0_i32_0 = arith.constant 0 : i32
    %2 = arith.cmpi ne, %1, %c0_i32_0 : i32
    scf.if %2 {
      %cst_15 = arith.constant 0.000000e+00 : f32
      %18 = vector.broadcast %cst_15 : f32 to vector<24x128xf32>
      %c0_16 = arith.constant 0 : index
      %c0_17 = arith.constant 0 : index
      %19 = vector.load %arg6[%c0_16, %c0_17] : memref<24x128xf32, #tpu.memory_space<vmem>>, vector<24x128xf32>
      tpu.vector_store %arg6[%c0_16, %c0_17], %18 {strides = array<i32>} : memref<24x128xf32, #tpu.memory_space<vmem>>, vector<24x128xf32>,
      %cst_18 = arith.constant 0.000000e+00 : f32
      %20 = vector.broadcast %cst_18 : f32 to vector<24x1xf32>
      %c0_19 = arith.constant 0 : index
      %c0_20 = arith.constant 0 : index
      %21 = vector.load %arg7[%c0_19, %c0_20] : memref<24x1xf32, #tpu.memory_space<vmem>>, vector<24x1xf32>
      tpu.vector_store %arg7[%c0_19, %c0_20], %20 {strides = array<i32>} : memref<24x1xf32, #tpu.memory_space<vmem>>, vector<24x1xf32>,
    } else {
    }
    %c0 = arith.constant 0 : index
    %c0_1 = arith.constant 0 : index
    %3 = vector.load %arg2[%c0, %c0_1] : memref<24x32xf32, #tpu.memory_space<vmem>>, vector<24x32xf32>
    %c0_2 = arith.constant 0 : index
    %c0_3 = arith.constant 0 : index
    %4 = vector.load %arg6[%c0_2, %c0_3] : memref<24x128xf32, #tpu.memory_space<vmem>>, vector<24x128xf32>
    %c0_4 = arith.constant 0 : index
    %c0_5 = arith.constant 0 : index
    %5 = vector.load %arg3[%c0_4, %c0_5] : memref<32x128xf32, #tpu.memory_space<vmem>>, vector<32x128xf32>
    %cst = arith.constant dense<0.000000e+00> : vector<24x128xf32>
    %6 = tpu.matmul %3, %5, %cst {dimension_numbers = #tpu.dot_dimension_numbers<[1], [0], [0], [1], [0, 0, 1, 1], [], []>} : vector<24x32xf32>, vector<32x128xf32>, vector<24x128xf32> -> vector<24x128xf32>
    %7 = arith.addf %4, %6 : vector<24x128xf32>
    %c0_6 = arith.constant 0 : index
    %c0_7 = arith.constant 0 : index
    %8 = vector.load %arg6[%c0_6, %c0_7] : memref<24x128xf32, #tpu.memory_space<vmem>>, vector<24x128xf32>
    tpu.vector_store %arg6[%c0_6, %c0_7], %7 {strides = array<i32>} : memref<24x128xf32, #tpu.memory_space<vmem>>, vector<24x128xf32>,
    %c0_8 = arith.constant 0 : index
    %c0_9 = arith.constant 0 : index
    %9 = vector.load %arg7[%c0_8, %c0_9] : memref<24x1xf32, #tpu.memory_space<vmem>>, vector<24x1xf32>
    %10 = arith.mulf %3, %3 : vector<24x32xf32>
    %cst_10 = arith.constant dense<0.000000e+00> : vector<24xf32>
    %11 = vector.multi_reduction <add>, %10, %cst_10 [1] : vector<24x32xf32> to vector<24xf32>
    %12 = vector.shape_cast %11 : vector<24xf32> to vector<24x1xf32>
    %13 = arith.addf %9, %12 : vector<24x1xf32>
    %c0_11 = arith.constant 0 : index
    %c0_12 = arith.constant 0 : index
    %14 = vector.load %arg7[%c0_11, %c0_12] : memref<24x1xf32, #tpu.memory_space<vmem>>, vector<24x1xf32>
    tpu.vector_store %arg7[%c0_11, %c0_12], %13 {strides = array<i32>} : memref<24x1xf32, #tpu.memory_space<vmem>>, vector<24x1xf32>,
    %c0_i32_13 = arith.constant 0 : i32
    %15 = arith.cmpi eq, %arg1, %c0_i32_13 : i32
    %16 = arith.extui %15 : i1 to i32
    %c0_i32_14 = arith.constant 0 : i32
    %17 = arith.cmpi ne, %16, %c0_i32_14 : i32
    scf.if %17 {
      %c0_15 = arith.constant 0 : index
      %c0_16 = arith.constant 0 : index
      %18 = vector.load %arg6[%c0_15, %c0_16] : memref<24x128xf32, #tpu.memory_space<vmem>>, vector<24x128xf32>
      %c0_17 = arith.constant 0 : index
      %c0_18 = arith.constant 0 : index
      %19 = vector.load %arg7[%c0_17, %c0_18] : memref<24x1xf32, #tpu.memory_space<vmem>>, vector<24x1xf32>
      %20 = math.sqrt %19 : vector<24x1xf32>
      %21 = arith.mulf %18, %18 : vector<24x128xf32>
      %cst_19 = arith.constant dense<0.000000e+00> : vector<24xf32>
      %22 = vector.multi_reduction <add>, %21, %cst_19 [1] : vector<24x128xf32> to vector<24xf32>
      %23 = vector.shape_cast %22 : vector<24xf32> to vector<24x1xf32>
      %24 = math.sqrt %23 : vector<24x1xf32>
      %cst_20 = arith.constant 1.000000e-15 : f32
      %25 = vector.broadcast %cst_20 : f32 to vector<24x1xf32>
      %26 = arith.addf %20, %25 : vector<24x1xf32>
      %cst_21 = arith.constant 1.000000e+00 : f32
      %27 = vector.broadcast %cst_21 : f32 to vector<24x1xf32>
      %28 = arith.divf %27, %26 : vector<24x1xf32>
      %29 = arith.mulf %24, %28 : vector<24x1xf32>
      %cst_22 = arith.constant 1.000000e+00 : f32
      %30 = vector.broadcast %cst_22 : f32 to vector<24x1xf32>
      %31 = arith.mulf %30, %20 : vector<24x1xf32>
      %cst_23 = arith.constant -0.999989986 : f32
      %cst_24 = arith.constant 0.999989986 : f32
      %32 = vector.broadcast %cst_23 : f32 to vector<24x1xf32>
      %33 = arith.maximumf %32, %31 : vector<24x1xf32>
      %34 = vector.broadcast %cst_24 : f32 to vector<24x1xf32>
      %35 = arith.minimumf %34, %33 : vector<24x1xf32>
      %cst_25 = arith.constant 1.000000e+00 : f32
      %36 = vector.broadcast %cst_25 : f32 to vector<24x1xf32>
      %37 = arith.addf %36, %35 : vector<24x1xf32>
      %cst_26 = arith.constant 1.000000e+00 : f32
      %38 = vector.broadcast %cst_26 : f32 to vector<24x1xf32>
      %39 = arith.subf %38, %35 : vector<24x1xf32>
      %40 = arith.divf %37, %39 : vector<24x1xf32>
      %41 = math.log %40 : vector<24x1xf32>
      %cst_27 = arith.constant 5.000000e-01 : f32
      %42 = vector.broadcast %cst_27 : f32 to vector<24x1xf32>
      %43 = arith.mulf %42, %41 : vector<24x1xf32>
      %44 = arith.mulf %29, %43 : vector<24x1xf32>
      %45 = math.tanh %44 : vector<24x1xf32>
      %cst_28 = arith.constant 1.000000e-15 : f32
      %46 = vector.broadcast %cst_28 : f32 to vector<24x1xf32>
      %47 = arith.addf %24, %46 : vector<24x1xf32>
      %cst_29 = arith.constant 1.000000e+00 : f32
      %48 = vector.broadcast %cst_29 : f32 to vector<24x1xf32>
      %49 = arith.mulf %48, %47 : vector<24x1xf32>
      %cst_30 = arith.constant 1.000000e+00 : f32
      %50 = vector.broadcast %cst_30 : f32 to vector<24x1xf32>
      %51 = arith.divf %50, %49 : vector<24x1xf32>
      %52 = arith.mulf %45, %51 : vector<24x1xf32>
      %53 = vector.broadcast %52 : vector<24x1xf32> to vector<24x128xf32>
      %54 = arith.mulf %53, %18 : vector<24x128xf32>
      %c0_31 = arith.constant 0 : index
      %c0_32 = arith.constant 0 : index
      %55 = vector.load %arg4[%c0_31, %c0_32] : memref<1x128xf32, #tpu.memory_space<vmem>>, vector<1x128xf32>
      %56 = arith.mulf %55, %55 : vector<1x128xf32>
      %cst_33 = arith.constant dense<0.000000e+00> : vector<1xf32>
      %57 = vector.multi_reduction <add>, %56, %cst_33 [1] : vector<1x128xf32> to vector<1xf32>
      %58 = vector.shape_cast %57 : vector<1xf32> to vector<1x1xf32>
      %59 = math.sqrt %58 : vector<1x1xf32>
      %60 = arith.mulf %52, %52 : vector<24x1xf32>
      %61 = arith.mulf %60, %23 : vector<24x1xf32>
      %cst_34 = arith.constant 1.000000e+00 : f32
      %62 = vector.broadcast %cst_34 : f32 to vector<24x1xf32>
      %63 = arith.mulf %62, %61 : vector<24x1xf32>
      %cst_35 = arith.constant 1.000000e+00 : f32
      %64 = vector.broadcast %cst_35 : f32 to vector<24x1xf32>
      %65 = arith.subf %64, %63 : vector<24x1xf32>
      %cst_36 = arith.constant 1.000000e-15 : f32
      %66 = vector.broadcast %cst_36 : f32 to vector<24x1xf32>
      %67 = arith.maximumf %65, %66 : vector<24x1xf32>
      %68 = vector.broadcast %59 : vector<1x1xf32> to vector<24x1xf32>
      %69 = arith.mulf %67, %68 : vector<24x1xf32>
      %cst_37 = arith.constant 1.000000e+00 : f32
      %70 = vector.broadcast %cst_37 : f32 to vector<1x1xf32>
      %71 = arith.mulf %70, %59 : vector<1x1xf32>
      %72 = math.tanh %71 : vector<1x1xf32>
      %cst_38 = arith.constant 1.000000e-15 : f32
      %73 = vector.broadcast %cst_38 : f32 to vector<24x1xf32>
      %74 = arith.addf %69, %73 : vector<24x1xf32>
      %cst_39 = arith.constant 1.000000e+00 : f32
      %75 = vector.broadcast %cst_39 : f32 to vector<24x1xf32>
      %76 = arith.mulf %75, %74 : vector<24x1xf32>
      %cst_40 = arith.constant 1.000000e+00 : f32
      %77 = vector.broadcast %cst_40 : f32 to vector<24x1xf32>
      %78 = arith.divf %77, %76 : vector<24x1xf32>
      %79 = vector.broadcast %72 : vector<1x1xf32> to vector<24x1xf32>
      %80 = arith.mulf %79, %78 : vector<24x1xf32>
      %81 = arith.mulf %80, %67 : vector<24x1xf32>
      %82 = vector.broadcast %55 : vector<1x128xf32> to vector<24x128xf32>
      %83 = arith.mulf %18, %82 : vector<24x128xf32>
      %cst_41 = arith.constant dense<0.000000e+00> : vector<24xf32>
      %84 = vector.multi_reduction <add>, %83, %cst_41 [1] : vector<24x128xf32> to vector<24xf32>
      %85 = vector.shape_cast %84 : vector<24xf32> to vector<24x1xf32>
      %86 = arith.mulf %52, %81 : vector<24x1xf32>
      %87 = arith.mulf %86, %85 : vector<24x1xf32>
      %88 = arith.mulf %81, %81 : vector<24x1xf32>
      %89 = vector.broadcast %58 : vector<1x1xf32> to vector<24x1xf32>
      %90 = arith.mulf %88, %89 : vector<24x1xf32>
      %cst_42 = arith.constant 2.000000e+00 : f32
      %cst_43 = arith.constant 1.000000e+00 : f32
      %91 = arith.mulf %cst_42, %cst_43 : f32
      %92 = vector.broadcast %91 : f32 to vector<24x1xf32>
      %93 = arith.mulf %92, %87 : vector<24x1xf32>
      %cst_44 = arith.constant 1.000000e+00 : f32
      %94 = vector.broadcast %cst_44 : f32 to vector<24x1xf32>
      %95 = arith.addf %94, %93 : vector<24x1xf32>
      %cst_45 = arith.constant 1.000000e+00 : f32
      %96 = vector.broadcast %cst_45 : f32 to vector<24x1xf32>
      %97 = arith.mulf %96, %90 : vector<24x1xf32>
      %98 = arith.addf %95, %97 : vector<24x1xf32>
      %99 = vector.broadcast %98 : vector<24x1xf32> to vector<24x128xf32>
      %100 = arith.mulf %99, %54 : vector<24x128xf32>
      %101 = arith.mulf %65, %81 : vector<24x1xf32>
      %102 = vector.broadcast %101 : vector<24x1xf32> to vector<24x128xf32>
      %103 = vector.broadcast %55 : vector<1x128xf32> to vector<24x128xf32>
      %104 = arith.mulf %102, %103 : vector<24x128xf32>
      %105 = arith.addf %100, %104 : vector<24x128xf32>
      %cst_46 = arith.constant 1.000000e+00 : f32
      %cst_47 = arith.constant 1.000000e+00 : f32
      %106 = arith.mulf %cst_46, %cst_47 : f32
      %107 = vector.broadcast %106 : f32 to vector<24x1xf32>
      %108 = arith.mulf %107, %61 : vector<24x1xf32>
      %109 = arith.mulf %108, %90 : vector<24x1xf32>
      %110 = arith.addf %95, %109 : vector<24x1xf32>
      %cst_48 = arith.constant 1.000000e-15 : f32
      %111 = vector.broadcast %cst_48 : f32 to vector<24x1xf32>
      %112 = arith.addf %110, %111 : vector<24x1xf32>
      %cst_49 = arith.constant 1.000000e+00 : f32
      %113 = vector.broadcast %cst_49 : f32 to vector<24x1xf32>
      %114 = arith.divf %113, %112 : vector<24x1xf32>
      %115 = vector.broadcast %114 : vector<24x1xf32> to vector<24x128xf32>
      %116 = arith.mulf %105, %115 : vector<24x128xf32>
      %c0_50 = arith.constant 0 : index
      %c0_51 = arith.constant 0 : index
      %117 = vector.load %arg5[%c0_50, %c0_51] : memref<24x128xf32, #tpu.memory_space<vmem>>, vector<24x128xf32>
      tpu.vector_store %arg5[%c0_50, %c0_51], %116 {strides = array<i32>} : memref<24x128xf32, #tpu.memory_space<vmem>>, vector<24x128xf32>,
    } else {
    }
    return
  }
  func.func @transform_0(%arg0: i32, %arg1: i32) -> (i32, i32) {
    %c0_i32 = arith.constant 0 : i32
    return %arg0, %arg1 : i32, i32
  }
  func.func @transform_1(%arg0: i32, %arg1: i32) -> (i32, i32) {
    %c0_i32 = arith.constant 0 : i32
    %c0_i32_0 = arith.constant 0 : i32
    return %arg1, %c0_i32 : i32, i32
  }
  func.func @transform_2(%arg0: i32, %arg1: i32) -> (i32, i32) {
    %c0_i32 = arith.constant 0 : i32
    %c0_i32_0 = arith.constant 0 : i32
    %c0_i32_1 = arith.constant 0 : i32
    return %c0_i32, %c0_i32_0 : i32, i32
  }
  func.func @transform_3(%arg0: i32, %arg1: i32) -> (i32, i32) {
    %c0_i32 = arith.constant 0 : i32
    %c0_i32_0 = arith.constant 0 : i32
    return %arg0, %c0_i32 : i32, i32
  }
}

</mosaic_0001>

<bundles_post_ra>
// kernel: tpu_custom_call.1
= control target key start
LH: loop header
LB: loop body
LE: loop exit
PB: predicated region body
PF: predicated region fallthrough
CT: control target
= control target key end

     0   :  { %8 = vsyncpa [#allocation5], 0  ;;  %s1249_s0 = inlined_call_operand.vmem [shape: f32[48,32], index: 0, kind: input, shape index: {}]   ;;  %s1250_s1 = inlined_call_operand.vmem [shape: f32[32,128], index: 1, kind: input, shape index: {}]   ;;  %s1251_s2 = inlined_call_operand.vmem [shape: f32[1,128], index: 2, kind: input, shape index: {}]   ;;  %s1252_s3 = inlined_call_operand.hbm [shape: f32[48,128], index: 3, kind: output, shape index: {}]  }
   0x1   :  { %10 = vsyncpa [#allocation5 + $0x1], 0  ;;  %s1043_s12 = smov 0   ;;  %s1045_s13 = smov 0  }
   0x2   :  { %s1047_s14 = smov 0   ;;  %s1049_s15 = smov 0  }
   0x3   :  { %s1051_s16 = smov 0   ;;  %s1053_s17 = smov 0  }
   0x4 LB: > { %s763_s18 = sadd.s32 4294967295, %s1014_s17   ;;  %s764_s19 = sadd.s32 4294967294, %s1014_s17   ;;  %s1014_s17 = sphi %s1053_s17, %s16_s17   ;;  %s1010_s16 = sphi %s1051_s16, %s1259_s16   ;;  %s1006_s15 = sphi %s1049_s15, %s1258_s15   ;;  %s1002_s14 = sphi %s1047_s14, %s1257_s14   ;;  %s998_s13 = sphi %s1045_s13, %s1256_s13   ;;  %s994_s12 = sphi %s1043_s12, %s1255_s12  }
   0x5   : > { %s28_s20 = sadd.s32 1, %s1010_s16  ;;  %s110_s21 = sadd.s32 1, %s1002_s14 }
   0x6   : > { %p30_p0 = scmp.ge.s32.totalorder %s28_s20, 2  ;;  %p120_p1 = scmp.ne.s32.totalorder %s1002_s14, %s998_s13 }
   0x7   : > { %p121_p2 = scmp.eq.s32.totalorder %s763_s18, 1  ;;  %p126_p3 = scmp.ne.s32.totalorder %s998_s13, %s994_s12 }
   0x8   : > { %s1261_s20 = smov (%p30_p0, %s28_s20), 0  ;;  %p127_p5 = scmp.eq.s32.totalorder %s764_s19, 1 }
   0x9   : > { %p1083_p4 = por %p121_p2, %p120_p1  ;;  %s107_s23 = ssub.s32 %s1010_s16, %s1261_s20 }
   0xa   : > { %p768_p6 = scmp.ge.s32.totalorder %s1014_s17, 1  ;;  %p108_p7 = scmp.eq.s32.totalorder %s107_s23, 0 }
   0xb   : > { %p1090_p8 = por %p127_p5, %p126_p3  ;;  %p169_p9 = scmp.lt.s32.totalorder %s1014_s17, 3 }
   0xc   : > { %s1096_s25 = scalar_select %p108_p7, %s1002_s14, %s110_s21  }
   0xd   : > { %p170_p10 = pnand %p768_p6, %p169_p9 }
   0xe   : > { %v234_v0 = vld [vmem:[%s1250_s1] sm:$0xff] (!%p170_p10)  ;;  %v235_v1 = vld [vmem:[%s1250_s1 + $0x8] sm:$0xff] (!%p170_p10)  ;;  %v236_v2 = vld [vmem:[%s1250_s1 + $0x10] sm:$0xff] (!%p170_p10)  ;;  %v1016_v3 = vmov (!%p170_p10), 0.0|0.0   ;;  %s201_s7 = smul.u32 (!%p170_p10), 3, %s1006_s15  ;;  %vm1017_vm0 = vmmov (!%p170_p10), 0   ;;  %v516_v26 = vlaneseq (!%p170_p10) }
   0xf   : > { %173 = sbr.rel (%p170_p10) target bundleno = 615 (0x267), region = 32  ;;  %804 = vmatprep.subr.bf16.mxu0 (!%p170_p10), %v1016_v3  ;;  %810 = vmatprep.subr.bf16.mxu1 (!%p170_p10), %v1016_v3  ;;  %v805_v4 = vpack.c.bf16 (!%p170_p10), %v235_v1, %v234_v0  ;;  %v237_v5 = vld [vmem:[%s1250_s1 + $0x18] sm:$0xff] (!%p170_p10)  ;;  %v1018_v6 = vmov (!%p170_p10), 0.0   ;;  %vm238_vm1 = vcmask (!%p170_p10), 261120   ;;  %vm224_vm2 = vcmask (!%p170_p10), 7168   ;;  %s198_s21 = sand.u32 (!%p170_p10), 1, %s998_s13  }
  0x10   : > { %795 = vmatprep.mubr.msk.f32.mxu0 (!%p170_p10), %vm1017_vm0, %v1018_v6  ;;  %798 = vmatprep.mubr.msk.f32.mxu1 (!%p170_p10), %vm1017_vm0, %v1018_v6  ;;  %v808_v7 = vpack.c.bf16 (!%p170_p10), %v237_v5, %v236_v2  ;;  %p202_p11 = scmp.lt.s32.totalorder (!%p170_p10), %s201_s7, 5  ;;  %225 = vst.msk [vmem:[#allocation3] sm:$0xff] (!%p170_p10), %vm224_vm2, %v1018_v6  ;;  %226 = vst.msk [vmem:[#allocation3 + $0x8] sm:$0xff] (!%p170_p10), %vm224_vm2, %v1018_v6  ;;  %v517_v27 = vshrl.u32 (!%p170_p10), %v516_v26, 7  ;;  %v491_v28 = vld [vmem:[%s1251_s2] sm:$0x1] (!%p170_p10) }
  0x11   : > { %806 = vmatpush3.bf16.msra.mxu0 (!%p170_p10), %v805_v4  ;;  %812 = vmatpush3.bf16.msra.mxu1 (!%p170_p10), %v805_v4  ;;  %227 = vst.msk [vmem:[#allocation3 + $0x10] sm:$0xff] (!%p170_p10), %vm224_vm2, %v1018_v6  ;;  %v492_v31 = vmul.f32 (!%p170_p10), %v491_v28, %v491_v28  ;;  %vm493_vm3 = vcmask (!%p170_p10), 1040384   ;;  %v1019_v45 = vmov (!%p170_p10), 0   ;;  %s814_s23 = smul.u32 (!%p170_p10), 24, %s198_s21  ;;  %s1020_s6 = smov (!%p170_p10), [#allocation4]  }
  0x12   : > { %807 = vmatprep.subr.bf16.mxu0 (!%p170_p10), %v1016_v3  ;;  %811 = vmatprep.subr.bf16.mxu1 (!%p170_p10), %v1016_v3  ;;  %v1134_v36 = vsub.s32 (!%p170_p10), 0, %v517_v27  ;;  %s779_s28 = smul.u32 (!%p170_p10), 384, %s1006_s15  ;;  %s1203_s15 = scalar_lea.sflag (!%p170_p10), [#allocation5], %s198_s21 }
  0x13   : > { %v494_v38 = vsel (!%p170_p10), %vm493_vm3, %v492_v31, 0.0  ;;  %877 = vset.pattern.permute.xlu1 (!%p170_p10), %v1019_v45  ;;  %876 = vset.pattern.permute.xlu0 (!%p170_p10), %v1019_v45  ;;  %s200_s26 = scalar_lea.vmem (!%p170_p10), [#allocation4], %s814_s23 }
  0x14   : > { %v1139_v40 = vrot.slane (!%p170_p10), %v491_v28, %v1134_v36  ;;  %s675_s27 = sshll.u32 (!%p170_p10), %s200_s26, 4  ;;  %s1201_s4 = scalar_lea.hbm (!%p170_p10), %s1252_s3, %s779_s28  ;;  %s1196_s27 = int_to_ptr.vmem [resolvable:$true] %s675_s27 }
  0x15   : > { %809 = vmatpush3.bf16.msra.mxu0 (!%p170_p10), %v808_v7  ;;  %813 = vmatpush3.bf16.msra.mxu1 (!%p170_p10), %v808_v7  ;;  %s936_s5 = scalar_lea.vmem (!%p170_p10), %s1196_s27, 384 }
  0x16   : > { %s1263_s7 = smov (!%p202_p11, %s201_s7), 5  ;;  %p937_p12 = scmp.ne.s32.totalorder %s1196_s27, %s936_s5 }
  0x17   : > { %s769_s8 = sshll.u32 %s1263_s7, 3  ;;  %v334_v17 = vld [vmem:[#allocation3] sm:$0xff]  ;;  %v335_v23 = vld [vmem:[#allocation3 + $0x8] sm:$0xff]  ;;  %s940_s7 = sshll.u32 %s1020_s6, 4  ;;  %s941_s7 = int_to_ptr.vmem [resolvable:$false] %s940_s7 }
  0x18   : > { %s208_s11 = scalar_lea.vmem %s1249_s0, %s769_s8  ;;  %v336_v18 = vld [vmem:[#allocation3 + $0x10] sm:$0xff]  ;;  %p938_p13 = pnand %p937_p12, %p1083_p4 }
  0x19   : > { %v228_v8 = vld [vmem:[%s208_s11] sm:$0xff]  ;;  %v229_v9 = vld [vmem:[%s208_s11 + $0x8] sm:$0xff]  ;;  %v230_v10 = vld [vmem:[%s208_s11 + $0x10] sm:$0xff]  ;;  %s942_s8 = scalar_lea.vmem %s941_s7, 768  ;;  %p943_p1 = scmp.lt.s32.totalorder %s1196_s27, %s941_s7 }
  0x1a   : > { %796 = vmatmul.mubr.msk.f32.vlgmr.msra.gmra.mrb[0].mxu0 %vm238_vm1, %v228_v8  ;;  %799 = vmatmul.mubr.msk.f32.vlgmr.msra.gmra.mrb[0].mxu1 %vm238_vm1, %v229_v9  ;;  %v337_v11 = vmul.f32 %v228_v8, %v228_v8  ;;  %v339_v12 = vmul.f32 %v230_v10, %v230_v10  ;;  %v338_v13 = vmul.f32 %v229_v9, %v229_v9  ;;  %p939_p0 = pneg %p938_p13  ;;  %p944_p2 = scmp.lt.s32.totalorder %s942_s8, %s936_s5 }
  0x1b   : > { %801 = vmatprep.mubr.msk.f32.mxu1 %vm1017_vm0, %v1018_v6 }
  0x1c   : > { %v340_v14 = vsel %vm238_vm1, %v337_v11, 0.0  ;;  %v346_v15 = vsel %vm238_vm1, %v339_v12, 0.0  ;;  %v343_v16 = vsel %vm238_vm1, %v338_v13, 0.0  ;;  %p945_p3 = por %p944_p2, %p943_p1 }
  0x1d   : > { %341 = vadd.xlane.f32.xlu0 %v340_v14  ;;  %347 = vadd.xlane.f32.xlu1 %v346_v15 }
  0x1e   : > { %802 = vmatmul.mubr.msk.f32.gmra.mrb[2].mxu1 %vm238_vm1, %v230_v10  ;;  %p946_p5 = pnand %p945_p3, %p939_p0 }
  0x21   : > { %344 = vadd.xlane.f32.xlu0 %v343_v16 }
  0xaa   : > { %v342_v19 = vpop.xlane.xlu0 %341  ;;  %v348_v20 = vpop.xlane.xlu1 %347 }
  0xab   : > { %v349_v21 = vadd.f32 %v342_v19, %v334_v17  ;;  %v351_v22 = vadd.f32 %v348_v20, %v336_v18 }
  0xad   : > { %353 = vst.msk [vmem:[#allocation3] sm:$0xff] %vm224_vm2, %v349_v21  ;;  %355 = vst.msk [vmem:[#allocation3 + $0x10] sm:$0xff] %vm224_vm2, %v351_v22 }
  0xae   : > { %v345_v24 = vpop.xlane.xlu0 %344 }
  0xaf   : > { %v350_v25 = vadd.f32 %v345_v24, %v335_v23 }
  0xb1   : > { %354 = vst.msk [vmem:[#allocation3 + $0x8] sm:$0xff] %vm224_vm2, %v350_v25 }
  0xb4   : > { %v362_v46 = vld [vmem:[#allocation3] sm:$0xff]  ;;  %v364_v48 = vld [vmem:[#allocation3 + $0x10] sm:$0xff] }
  0xb5   : > { %878 = vrsqrt.f32 %v362_v46  ;;  %vm367_vm4 = vcmp.eq.f32.partialorder %v362_v46, inf  ;;  %v370_v53 = vand.u32 2147483648, %v362_v46  ;;  %vm369_vm6 = vcmp.eq.f32.partialorder %v362_v46, 0.0 }
  0xb6   : > { %vm381_vm8 = vcmp.eq.f32.partialorder %v364_v48, inf  ;;  %v384_v62 = vand.u32 2147483648, %v364_v48  ;;  %vm383_vm9 = vcmp.eq.f32.partialorder %v364_v48, 0.0 }
  0xb8   : > { %v363_v47 = vld [vmem:[#allocation3 + $0x8] sm:$0xff] }
  0xb9   : > { %880 = vrsqrt.f32 %v363_v47  ;;  %vm374_vm5 = vcmp.eq.f32.partialorder %v363_v47, inf  ;;  %v377_v56 = vand.u32 2147483648, %v363_v47  ;;  %vm376_vm7 = vcmp.eq.f32.partialorder %v363_v47, 0.0 }
  0xba   : > { %882 = vrsqrt.f32 %v364_v48 }
  0xbf   : > { %v879_v49 = vpop.eup %878 }
  0xc0   : > { %v366_v51 = vmul.f32 %v879_v49, %v362_v46 }
  0xc2   : > { %v368_v54 = vsel %vm367_vm4, %v362_v46, %v366_v51 }
  0xc3   : > { %v881_v50 = vpop.eup %880  ;;  %v371_v58 = vsel %vm369_vm6, %v370_v53, %v368_v54 }
  0xc4   : > { %v373_v52 = vmul.f32 %v881_v50, %v363_v47  ;;  %v883_v55 = vpop.eup %882  ;;  %v773_v61 = vclamps-f32 %v371_v58, 0.99999  ;;  %v416_v18 = vadd.f32 1e-15, %v371_v58 }
  0xc5   : > { %v380_v59 = vmul.f32 %v883_v55, %v364_v48 }
  0xc6   : > { %v375_v57 = vsel %vm374_vm5, %v363_v47, %v373_v52  ;;  %v437_v1 = vsub.f32 1.0, %v773_v61  ;;  %v434_v6 = vadd.f32 1.0, %v773_v61 }
  0xc7   : > { %v378_v60 = vsel %vm376_vm7, %v377_v56, %v375_v57  ;;  %v382_v63 = vsel %vm381_vm8, %v364_v48, %v380_v59 }
  0xc8   : > { %v774_v0 = vclamps-f32 %v378_v60, 0.99999  ;;  %v385_v2 = vsel %vm383_vm9, %v384_v62, %v382_v63  ;;  %884 = vrcp.f32 %v437_v1  ;;  %v417_v14 = vadd.f32 1e-15, %v378_v60 }
  0xc9   : > { %v775_v4 = vclamps-f32 %v385_v2, 0.99999  ;;  %v418_v21 = vadd.f32 1e-15, %v385_v2 }
  0xca   : > { %v438_v3 = vsub.f32 1.0, %v774_v0  ;;  %v435_v8 = vadd.f32 1.0, %v774_v0 }
  0xcb   : > { %v439_v5 = vsub.f32 1.0, %v775_v4  ;;  %v436_v12 = vadd.f32 1.0, %v775_v4 }
  0xcc   : > { %886 = vrcp.f32 %v438_v3 }
  0xcd   : > { %888 = vrcp.f32 %v439_v5 }
  0xd2   : > { %v885_v7 = vpop.eup %884 }
  0xd3   : > { %v441_v10 = vmul.f32 %v885_v7, %v434_v6 }
  0xd5   : > { %890 = vlog2.f32 %v441_v10 }
  0xd6   : > { %v887_v9 = vpop.eup %886 }
  0xd7   : > { %v443_v11 = vmul.f32 %v887_v9, %v435_v8  ;;  %v889_v13 = vpop.eup %888 }
  0xd8   : > { %v445_v17 = vmul.f32 %v889_v13, %v436_v12 }
  0xd9   : > { %892 = vlog2.f32 %v443_v11 }
  0xdf   : > { %v891_v20 = vpop.eup %890 }
  0xe0   : > { %v447_v23 = vmul.f32 0.6931472, %v891_v20 }
  0xe3   : > { %v893_v22 = vpop.eup %892 }
  0xe4   : > { %v449_v25 = vmul.f32 0.6931472, %v893_v22 }
  0xed   : > { %v1126_v29 = vpop.f32.mrb[0].mxu0  ;;  %v1128_v30 = vpop.f32.mrb[0].mxu1 }
  0xee   : > { %v797_v32 = vpop.f32.mrb[1].mxu0  ;;  %v800_v33 = vpop.f32.mrb[1].mxu1  ;;  %v387_v34 = vmul.f32 %v1128_v30, %v1128_v30  ;;  %v386_v35 = vmul.f32 %v1126_v29, %v1126_v29  ;;  %v550_v42 = vmul.f32 %v1139_v40, %v1128_v30  ;;  %v549_v43 = vmul.f32 %v1139_v40, %v1126_v29 }
  0xef   : > { %v452_v33 = vmul.f32 0.5, %v447_v23 }
  0xf0   : > { %391 = vadd.xlane.f32.xlu0 %v387_v34  ;;  %389 = vadd.xlane.f32.xlu1 %v386_v35 }
  0xf1   : > { %v1136_v37 = vpop.f32.mrb[2].mxu1 }
  0xf2   : > { %v803_v39 = vpop.f32.mrb[3].mxu1  ;;  %v388_v41 = vmul.f32 %v1136_v37, %v1136_v37  ;;  %v551_v44 = vmul.f32 %v1139_v40, %v1136_v37 }
  0xf4   : > { %495 = vadd.xlane.f32.xlu0 %v494_v38  ;;  %393 = vadd.xlane.f32.xlu1 %v388_v41 }
  0xf8   : > { %554 = vadd.xlane.f32.xlu0 %v550_v42  ;;  %552 = vadd.xlane.f32.xlu1 %v549_v43 }
  0xfc   : > { %556 = vadd.xlane.f32.xlu1 %v551_v44  ;;  %v453_v44 = vmul.f32 0.5, %v449_v25 }
 0x17d   : > { %v1149_v15 = vpop.xlane.xlu0 %391  ;;  %v1151_v16 = vpop.xlane.xlu1 %389 }
 0x17e   : > { %894 = vrsqrt.f32 %v1149_v15  ;;  %vm404_vm10 = vcmp.eq.f32.partialorder %v1149_v15, inf  ;;  %v407_v31 = vand.u32 2147483648, %v1149_v15  ;;  %vm406_vm11 = vcmp.eq.f32.partialorder %v1149_v15, 0.0 }
 0x17f   : > { %896 = vrsqrt.f32 %v1151_v16  ;;  %vm397_vm12 = vcmp.eq.f32.partialorder %v1151_v16, inf  ;;  %v400_v38 = vand.u32 2147483648, %v1151_v16  ;;  %vm399_vm13 = vcmp.eq.f32.partialorder %v1151_v16, 0.0 }
 0x180   : > { %898 = vrcp.f32 %v417_v14 }
 0x181   : > { %v1155_v19 = vpop.xlane.xlu1 %393  ;;  %900 = vlog2.f32 %v445_v17  ;;  %v1168_v43 = vpop.xlane.xlu0 %495 }
 0x182   : > { %902 = vrcp.f32 %v416_v18  ;;  %vm411_vm14 = vcmp.eq.f32.partialorder %v1155_v19, inf  ;;  %v414_v53 = vand.u32 2147483648, %v1155_v19  ;;  %vm413_vm15 = vcmp.eq.f32.partialorder %v1155_v19, 0.0 }
 0x183   : > { %904 = vrsqrt.f32 %v1155_v19  ;;  %vm499_vm0 = vcmp.eq.f32.partialorder %v1168_v43, inf  ;;  %v502_v6 = vand.u32 2147483648, %v1168_v43  ;;  %vm501_vm1 = vcmp.eq.f32.partialorder %v1168_v43, 0.0 }
 0x184   : > { %906 = vrcp.f32 %v418_v21 }
 0x185   : > { %908 = vrsqrt.f32 %v1168_v43 }
 0x188   : > { %v895_v24 = vpop.eup %894 }
 0x189   : > { %v897_v26 = vpop.eup %896  ;;  %v403_v27 = vmul.f32 %v895_v24, %v1149_v15 }
 0x18a   : > { %v899_v28 = vpop.eup %898  ;;  %v396_v32 = vmul.f32 %v897_v26, %v1151_v16 }
 0x18b   : > { %v901_v34 = vpop.eup %900  ;;  %v405_v35 = vsel %vm404_vm10, %v1149_v15, %v403_v27 }
 0x18c   : > { %v903_v39 = vpop.eup %902  ;;  %v408_v41 = vsel %vm406_vm11, %v407_v31, %v405_v35  ;;  %v398_v42 = vsel %vm397_vm12, %v1151_v16, %v396_v32  ;;  %v451_v52 = vmul.f32 0.6931472, %v901_v34 }
 0x18d   : > { %v905_v45 = vpop.eup %904  ;;  %v426_v46 = vmul.f32 %v899_v28, %v408_v41  ;;  %v401_v47 = vsel %vm399_vm13, %v400_v38, %v398_v42  ;;  %v462_v48 = vadd.f32 1e-15, %v408_v41 }
 0x18e   : > { %v425_v49 = vmul.f32 %v903_v39, %v401_v47  ;;  %v410_v50 = vmul.f32 %v905_v45, %v1155_v19  ;;  %v461_v51 = vadd.f32 1e-15, %v401_v47  ;;  %v907_v57 = vpop.eup %906  ;;  %v454_v60 = vmul.f32 0.5, %v451_v52 }
 0x18f   : > { %v456_v54 = vmul.f32 %v453_v44, %v426_v46  ;;  %910 = vrcp.f32 %v462_v48  ;;  %v909_v63 = vpop.eup %908  ;;  %v570_v52 = vrot.slane %v1168_v43, %v1134_v36 }
 0x190   : > { %v412_v55 = vsel %vm411_vm14, %v1155_v19, %v410_v50  ;;  %v455_v56 = vmul.f32 %v452_v33, %v425_v49  ;;  %v498_v1 = vmul.f32 %v909_v63, %v1168_v43  ;;  %v553_v49 = vpop.xlane.xlu1 %552  ;;  %v555_v50 = vpop.xlane.xlu0 %554 }
 0x191   : > { %v415_v58 = vsel %vm413_vm15, %v414_v53, %v412_v55  ;;  %912 = vtanh.f32 %v456_v54 }
 0x192   : > { %v427_v59 = vmul.f32 %v907_v57, %v415_v58  ;;  %914 = vrcp.f32 %v461_v51  ;;  %v463_v61 = vadd.f32 1e-15, %v415_v58  ;;  %v500_v7 = vsel %vm499_vm0, %v1168_v43, %v498_v1 }
 0x193   : > { %916 = vtanh.f32 %v455_v56  ;;  %v503_v14 = vsel %vm501_vm1, %v502_v6, %v500_v7 }
 0x194   : > { %v457_v62 = vmul.f32 %v454_v60, %v427_v59  ;;  %918 = vrcp.f32 %v463_v61  ;;  %v519_v23 = vrot.slane %v503_v14, %v1134_v36 }
 0x196   : > { %920 = vtanh.f32 %v457_v62 }
 0x197   : > { %922 = vtanh.f32 %v503_v14 }
 0x199   : > { %v911_v0 = vpop.eup %910 }
 0x19b   : > { %v913_v2 = vpop.eup %912 }
 0x19c   : > { %v915_v3 = vpop.eup %914  ;;  %v471_v4 = vmul.f32 %v913_v2, %v911_v0  ;;  %v557_v2 = vpop.xlane.xlu1 %556 }
 0x19d   : > { %v917_v5 = vpop.eup %916 }
 0x19e   : > { %v505_v8 = vmul.f32 %v471_v4, %v471_v4  ;;  %v470_v9 = vmul.f32 %v917_v5, %v915_v3  ;;  %480 = vperm.xlu1 %877, %v471_v4   ;;  %v919_v10 = vpop.eup %918 }
 0x1a0   : > { %v921_v11 = vpop.eup %920  ;;  %v508_v12 = vmul.f32 %v505_v8, %v1149_v15  ;;  %v504_v13 = vmul.f32 %v470_v9, %v470_v9  ;;  %475 = vperm.xlu0 %876, %v470_v9  }
 0x1a1   : > { %v472_v17 = vmul.f32 %v921_v11, %v919_v10  ;;  %v923_v35 = vpop.eup %922 }
 0x1a2   : > { %v511_v18 = vsub.f32 1.0, %v508_v12  ;;  %v507_v20 = vmul.f32 %v504_v13, %v1151_v16  ;;  %v536_v38 = vrot.slane %v923_v35, %v1134_v36 }
 0x1a3   : > { %v506_v21 = vmul.f32 %v472_v17, %v472_v17  ;;  %485 = vperm.xlu1 %877, %v472_v17  }
 0x1a4   : > { %v514_v22 = vmax.f32 %v511_v18, 1e-15  ;;  %v510_v24 = vsub.f32 1.0, %v507_v20 }
 0x1a5   : > { %v509_v25 = vmul.f32 %v506_v21, %v1155_v19 }
 0x1a6   : > { %v521_v26 = vmul.f32 %v519_v23, %v514_v22  ;;  %v513_v27 = vmax.f32 %v510_v24, 1e-15 }
 0x1a7   : > { %v512_v28 = vsub.f32 1.0, %v509_v25 }
 0x1a8   : > { %v525_v15 = vadd.f32 1e-15, %v521_v26  ;;  %v520_v31 = vmul.f32 %v519_v23, %v513_v27 }
 0x1a9   : > { %v515_v32 = vmax.f32 %v512_v28, 1e-15 }
 0x1aa   : > { %924 = vrcp.f32 %v525_v15  ;;  %v524_v33 = vadd.f32 1e-15, %v520_v31 }
 0x1ab   : > { %v522_v34 = vmul.f32 %v519_v23, %v515_v32 }
 0x1ac   : > { %926 = vrcp.f32 %v524_v33 }
 0x1ad   : > { %v526_v16 = vadd.f32 1e-15, %v522_v34 }
 0x1af   : > { %928 = vrcp.f32 %v526_v16 }
 0x1b4   : > { %v925_v39 = vpop.eup %924 }
 0x1b5   : > { %v538_v41 = vmul.f32 %v925_v39, %v536_v38 }
 0x1b6   : > { %v927_v42 = vpop.eup %926 }
 0x1b7   : > { %v541_v19 = vmul.f32 %v538_v41, %v514_v22  ;;  %v537_v44 = vmul.f32 %v927_v42, %v536_v38 }
 0x1b9   : > { %v929_v45 = vpop.eup %928  ;;  %v559_v46 = vmul.f32 %v541_v19, %v471_v4  ;;  %v565_v47 = vmul.f32 %v541_v19, %v541_v19  ;;  %v540_v48 = vmul.f32 %v537_v44, %v513_v27  ;;  %v602_v5 = vmul.f32 %v541_v19, %v511_v18 }
 0x1ba   : > { %v539_v51 = vmul.f32 %v929_v45, %v536_v38 }
 0x1bb   : > { %v562_v53 = vmul.f32 %v559_v46, %v555_v50  ;;  %v558_v54 = vmul.f32 %v540_v48, %v470_v9  ;;  %v564_v55 = vmul.f32 %v540_v48, %v540_v48  ;;  %v601_v57 = vmul.f32 %v540_v48, %v510_v24 }
 0x1bc   : > { %v542_v56 = vmul.f32 %v539_v51, %v515_v32  ;;  %v572_v58 = vmul.f32 %v570_v52, %v565_v47 }
 0x1bd   : > { %v575_v59 = vmul.f32 2.0, %v562_v53  ;;  %v571_v60 = vmul.f32 %v570_v52, %v564_v55  ;;  %v561_v61 = vmul.f32 %v558_v54, %v553_v49  ;;  %606 = vperm.xlu1 %877, %v601_v57  }
 0x1be   : > { %v560_v62 = vmul.f32 %v542_v56, %v472_v17  ;;  %v566_v63 = vmul.f32 %v542_v56, %v542_v56  ;;  %v626_v6 = vmul.f32 %v572_v58, %v508_v12  ;;  %v603_v13 = vmul.f32 %v542_v56, %v512_v28 }
 0x1bf   : > { %v578_v0 = vadd.f32 1.0, %v575_v59  ;;  %v574_v1 = vmul.f32 2.0, %v561_v61  ;;  %v625_v36 = vmul.f32 %v571_v60, %v507_v20 }
 0x1c0   : > { %v573_v3 = vmul.f32 %v570_v52, %v566_v63  ;;  %v563_v4 = vmul.f32 %v560_v62, %v557_v2 }
 0x1c1   : > { %v577_v43 = vadd.f32 1.0, %v574_v1  ;;  %611 = vperm.xlu1 %877, %v602_v5   ;;  %v629_v8 = vadd.f32 %v626_v6, %v578_v0  ;;  %v581_v12 = vadd.f32 %v578_v0, %v572_v58 }
 0x1c2   : > { %v576_v7 = vmul.f32 2.0, %v563_v4  ;;  %v627_v10 = vmul.f32 %v573_v3, %v509_v25 }
 0x1c3   : > { %v628_v9 = vadd.f32 %v625_v36, %v577_v43  ;;  %v632_v21 = vadd.f32 1e-15, %v629_v8  ;;  %v580_v22 = vadd.f32 %v577_v43, %v571_v60 }
 0x1c4   : > { %v579_v11 = vadd.f32 1.0, %v576_v7 }
 0x1c5   : > { %v631_v14 = vadd.f32 1e-15, %v628_v9  ;;  %616 = vperm.xlu1 %877, %v603_v13  }
 0x1c6   : > { %v630_v17 = vadd.f32 %v627_v10, %v579_v11  ;;  %v582_v18 = vadd.f32 %v579_v11, %v573_v3 }
 0x1c7   : > { %930 = vrcp.f32 %v631_v14 }
 0x1c8   : > { %v633_v23 = vadd.f32 1e-15, %v630_v17 }
 0x1c9   : > { %585 = vperm.xlu1 %877, %v580_v22  }
 0x1ca   : > { %932 = vrcp.f32 %v633_v23 }
 0x1cb   : > { %934 = vrcp.f32 %v632_v21 }
 0x1cd   : > { %590 = vperm.xlu1 %877, %v581_v12  }
 0x1d1   : > { %v931_v20 = vpop.eup %930  ;;  %595 = vperm.xlu1 %877, %v582_v18  }
 0x1d2   : > { %642 = vperm.xlu0 %876, %v931_v20  }
 0x1d4   : > { %v933_v24 = vpop.eup %932 }
 0x1d5   : > { %v935_v25 = vpop.eup %934 }
 0x1d6   : > { %647 = vperm.xlu1 %877, %v935_v25   ;;  %652 = vperm.xlu0 %876, %v933_v24  }
 0x21d   : > { %v481_v26 = vpop.permute.xlu1 %480 }
 0x21e   : > { %v489_v38 = vmul.f32 %v481_v26, %v1128_v30 }
 0x21f   : > { %v476_v32 = vpop.permute.xlu0 %475 }
 0x220   : > { %v488_v34 = vmul.f32 %v476_v32, %v1126_v29 }
 0x222   : > { %v486_v27 = vpop.permute.xlu1 %485 }
 0x223   : > { %v490_v41 = vmul.f32 %v486_v27, %v1136_v37 }
 0x23c   : > { %v607_v28 = vpop.permute.xlu1 %606 }
 0x23d   : > { %v619_v39 = vmul.f32 %v607_v28, %v1139_v40 }
 0x240   : > { %v612_v15 = vpop.permute.xlu1 %611 }
 0x241   : > { %v620_v46 = vmul.f32 %v612_v15, %v1139_v40 }
 0x244   : > { %v617_v31 = vpop.permute.xlu1 %616 }
 0x245   : > { %v621_v47 = vmul.f32 %v617_v31, %v1139_v40 }
 0x248   : > { %v586_v33 = vpop.permute.xlu1 %585 }
 0x249   : > { %v598_v16 = vmul.f32 %v586_v33, %v488_v34 }
 0x24b   : > { %v622_v19 = vadd.f32 %v619_v39, %v598_v16 }
 0x24c   : > { %v591_v35 = vpop.permute.xlu1 %590 }
 0x24d   : > { %v599_v42 = vmul.f32 %v591_v35, %v489_v38 }
 0x24f   : > { %v623_v30 = vadd.f32 %v620_v46, %v599_v42 }
 0x250   : > { %v596_v44 = vpop.permute.xlu1 %595 }
 0x251   : > { %v643_v45 = vpop.permute.xlu0 %642  ;;  %v600_v29 = vmul.f32 %v596_v44, %v490_v41 }
 0x252   : > { %v655_v48 = vmul.f32 %v643_v45, %v622_v19 }
 0x253   : > { %v624_v49 = vadd.f32 %v621_v47, %v600_v29 }
 0x254   : > { %658 = vst [vmem:[%s200_s26] sm:$0xff] %v655_v48 }
 0x255   : > { %v648_v37 = vpop.permute.xlu1 %647  ;;  %v653_v50 = vpop.permute.xlu0 %652 }
 0x256   : > { %v656_v51 = vmul.f32 %v648_v37, %v623_v30  ;;  %v657_v52 = vmul.f32 %v653_v50, %v624_v49 }
 0x258   : > { %659 = vst [vmem:[%s200_s26 + $0x8] sm:$0xff] %v656_v51  ;;  %660 = vst [vmem:[%s200_s26 + $0x10] sm:$0xff] %v657_v52 }
 0x259   : > { %949 = shalt.err (!%p946_p5)
}
 0x25a   : > { %s950_s9 = scalar_lea.hbm %s1201_s4, 384  ;;  %s954_s18 = scalar_lea.hbm %s1252_s3, 768 }
 0x25b   : > { %p951_p6 = scmp.ne.s32.totalorder %s1201_s4, %s950_s9  ;;  %p955_p10 = scmp.lt.u32.totalorder %s1201_s4, %s1252_s3 }
 0x25c   : > { %p956_p11 = scmp.lt.u32.totalorder %s954_s18, %s950_s9  ;;  %p958_p13 = scmp.lt.u32.totalorder %s950_s9, %s1201_s4 }
 0x25d   : > { %p952_p7 = pnand %p951_p6, %p1083_p4 }
 0x25e   : > { %p957_p12 = por %p956_p11, %p955_p10 }
 0x25f   : > { %p953_p9 = pneg %p952_p7 }
 0x260   : > { %p959_p0 = por %p958_p13, %p957_p12 }
 0x262   : > { %p960_p1 = pnand %p959_p0, %p953_p9 }
 0x264   : > { %963 = shalt.err (!%p960_p1)
}
 0x265   : > { %s1021_s23 = smov 128   ;;  %s1022_s26 = smov 8  }
 0x266   : > { %815 = dma.vmem_to_hbm [thread:$0]  (%p1083_p4), %s1196_s27, 384, %s1201_s4, %s1203_s15, %s1021_s23, %s1021_s23, %s1022_s26  }
 0x267 PF: > { %p821_p2 = scmp.ge.s32.totalorder %s1014_s17, 2  ;;  %s690_s28 = sand.u32 1, %s994_s12  }
 0x268   : > { %s691_s29 = scalar_lea.sflag [#allocation5], %s690_s28 }
 0x269   : > { %p818_p3 = pnand %p821_p2, %p1090_p8 }
 0x26b   : > { %989 = dma.done.wait (!%p818_p3), %s691_s29, 384  }
 0x26c   : > { %991 = vsyncadd (!%p818_p3), %s691_s29, 4294966912  ;;  %s16_s17 = sadd.s32 1, %s1014_s17   ;;  %s1255_s12 = smov %s998_s13 }
 0x26d   : > { %p13_p5 = scmp.ge.s32.totalorder %s16_s17, 4   ;;  %s1256_s13 = smov %s1002_s14 }
 0x26e   : > { %s1257_s14 = smov %s1096_s25  ;;  %s1258_s15 = smov %s1010_s16 }
 0x26f   : > { %s1259_s16 = smov %s1261_s20  ;;  %15 = sbr.rel (!%p13_p5) target bundleno = 4 (0x4), region = 78 }
 0x276   :  { %696 = vsyncpa [#allocation5], 1 }
 0x277   :  { %698 = vsyncpa [#allocation5 + $0x1], 1 }

</bundles_post_ra>
